<compile_context>
chip_gen: v5e
topology: v5e:2x2
jax: 0.10.0
libtpu: 0.0.40
codegen_flags: <defaults>
</compile_context>

<pallas_src>
import jax
import jax.numpy as jnp
from jax.experimental import pallas as pl
from jax.experimental.pallas import tpu as pltpu

LANE = 128
DEFAULT_TILE_ROWS = 8192                # (8192, 128) f32 = 4 MiB / input / step
VMEM_LIMIT_BYTES = 32 * 1024 * 1024     # 2 inputs x 2 bufs x 4 MiB + headroom


def _round_up(x, m):
    return -(-x // m) * m


def _sublane_pack(dtype):
    # Rows per vreg for this dtype: 8 (32-bit), 16 (16-bit), 32 (8-bit).
    return max(8, 32 // max(1, jnp.dtype(dtype).itemsize))


def _num_tensorcores():
    # v7x exposes 2 TensorCores per chip; v5e/v6e have 1.
    try:
        kind = jax.devices()[0].device_kind.lower()
    except Exception:
        return 1
    return 2 if ("v7" in kind or "7x" in kind) else 1


def _make_dice_kernel(tile_rows):
    sub = tile_rows // 8

    def kernel(pred_ref, target_ref, inter_ref, denom_ref):
        s = pl.program_id(1)

        @pl.when(s == 0)
        def _():
            inter_ref[...] = jnp.zeros_like(inter_ref)
            denom_ref[...] = jnp.zeros_like(denom_ref)

        x = pred_ref[...].astype(jnp.float32)
        # sigmoid(x) = 0.5 * tanh(x/2) + 0.5 : one EUP push instead of exp+recip.
        p = 0.5 * jnp.tanh(0.5 * x) + 0.5
        t = target_ref[...].astype(jnp.float32)

        # (tile_rows, 128) -> (tile_rows//8, 8, 128) is layout preserving; the
        # axis-0 sum is pure VALU vreg adds.  The cross-sublane/lane reduction
        # is deferred to the tiny wrapper-side combine.
        inter_ref[...] += jnp.sum((p * t).reshape(sub, 8, LANE), axis=0)[None]
        denom_ref[...] += jnp.sum((p + t).reshape(sub, 8, LANE), axis=0)[None]

    return kernel


def _partial_sums(pred2d, target2d, tile_rows, num_splits, steps_per_split,
                  core_parallel):
    kernel = _make_dice_kernel(tile_rows)
    in_map = lambda c, s: (c * steps_per_split + s, 0)
    out_map = lambda c, s: (c, 0, 0)
    leading = pltpu.CORE_PARALLEL if core_parallel else pltpu.PARALLEL

    return pl.pallas_call(
        kernel,
        out_shape=(
            jax.ShapeDtypeStruct((num_splits, 8, LANE), jnp.float32),
            jax.ShapeDtypeStruct((num_splits, 8, LANE), jnp.float32),
        ),
        grid_spec=pltpu.PrefetchScalarGridSpec(
            num_scalar_prefetch=0,
            grid=(num_splits, steps_per_split),
            in_specs=[
                pl.BlockSpec((tile_rows, LANE), in_map),
                pl.BlockSpec((tile_rows, LANE), in_map),
            ],
            out_specs=[
                pl.BlockSpec((1, 8, LANE), out_map),
                pl.BlockSpec((1, 8, LANE), out_map),
            ],
        ),
        compiler_params=pltpu.CompilerParams(
            dimension_semantics=(leading, pltpu.ARBITRARY),
            vmem_limit_bytes=VMEM_LIMIT_BYTES,
        ),
    )(pred2d, target2d)


def dice_loss(pred, target, *, tile_rows=DEFAULT_TILE_ROWS, num_splits=None):
    """Pallas DiceLoss: 1 - (2*sum(sig(p)*t)+eps)/(sum(sig(p))+sum(t)+eps)."""
    assert pred.shape == target.shape
    n = pred.size
    smooth = 1e-06

    cores = _num_tensorcores()
    if num_splits is None:
        num_splits = cores
    num_splits = max(1, int(num_splits))

    pack = max(_sublane_pack(pred.dtype), _sublane_pack(target.dtype))
    tile_rows = _round_up(max(int(tile_rows), pack), pack)

    pred_flat = pred.reshape(-1)
    target_flat = target.reshape(-1)
    rows_needed = -(-n // LANE)

    pad_elems = 0
    tail_rows = 0
    pred_tail = target_tail = None

    if rows_needed <= tile_rows:
        # Small input: one block covers everything.  Padding a <=1-tile array
        # is cheap; the pad is corrected exactly in the finalize below.
        tile_rows = _round_up(max(rows_needed, 1), pack)
        rows = tile_rows
        pad_elems = rows * LANE - n
        if pad_elems:
            pred_flat = jnp.pad(pred_flat, (0, pad_elems))
            target_flat = jnp.pad(target_flat, (0, pad_elems))
        pred2d = pred_flat.reshape(rows, LANE)
        target2d = target_flat.reshape(rows, LANE)
        num_splits, steps_per_split = 1, 1
    else:
        # Large input: stream the tile-aligned prefix through the kernel with
        # no full-array copy (reshape is a bitcast when n % 128 == 0); the
        # ragged row tail (< 1 tile) is reduced with plain jnp in the wrapper.
        rem = n % LANE
        if rem:
            # TODO(synk): lane-ragged (n % 128 != 0) large inputs still pay one
            # pad copy; a manual-DMA 1-D path would avoid it.
            pad_elems = LANE - rem
            pred_flat = jnp.pad(pred_flat, (0, pad_elems))
            target_flat = jnp.pad(target_flat, (0, pad_elems))
        rows = (n + pad_elems) // LANE
        pred2d = pred_flat.reshape(rows, LANE)
        target2d = target_flat.reshape(rows, LANE)

        full_tiles = rows // tile_rows                    # >= 1 here
        num_splits = max(1, min(num_splits, full_tiles))
        steps_per_split = full_tiles // num_splits
        covered_rows = num_splits * steps_per_split * tile_rows
        tail_rows = rows - covered_rows
        if tail_rows:
            pred_tail = pred2d[covered_rows:]
            target_tail = target2d[covered_rows:]

    core_parallel = (cores > 1) and (num_splits > 1)
    inter_p, denom_p = _partial_sums(pred2d, target2d, tile_rows, num_splits,
                                     steps_per_split, core_parallel)

    # Tiny finalize: reduce the (num_splits, 8, 128) partials, add the row
    # tail, correct for zero padding, and form the loss.
    inter = jnp.sum(inter_p)
    denom = jnp.sum(denom_p)

    if tail_rows:
        tp = 0.5 * jnp.tanh(0.5 * pred_tail.astype(jnp.float32)) + 0.5
        tt = target_tail.astype(jnp.float32)
        inter = inter + jnp.sum(tp * tt)
        denom = denom + jnp.sum(tp) + jnp.sum(tt)

    if pad_elems:
        # Each zero-padded pred contributes sigmoid(0) = 0.5 to the denominator
        # and nothing to the intersection (padded targets are 0).
        denom = denom - 0.5 * pad_elems

    return 1.0 - (2.0 * inter + smooth) / (denom + smooth)


def dice_loss_ref(pred, target):
    smooth = 1e-06
    p = jax.nn.sigmoid(pred.astype(jnp.float32))
    t = target.astype(jnp.float32)
    inter = jnp.sum(p * t)
    return 1.0 - (2.0 * inter + smooth) / (jnp.sum(p) + jnp.sum(t) + smooth)


if __name__ == "__main__":
    key = jax.random.PRNGKey(0)
    k1, k2 = jax.random.split(key)

    # 1) NCHW-like logits + binary mask, lane-aligned size (small / 1-block path).
    pred = jax.random.normal(k1, (2, 4, 16, 16), dtype=jnp.float32)
    target = (jax.random.uniform(k2, (2, 4, 16, 16)) > 0.5).astype(jnp.float32)
    loss = jax.block_until_ready(dice_loss(pred, target))
    ref = jax.block_until_ready(dice_loss_ref(pred, target))
    assert jnp.allclose(loss, ref, atol=1e-5, rtol=1e-5), (loss, ref)

    # 2) Non-aligned size with a small tile: exercises the large path with a
    #    lane-pad correction and a jnp row tail.
    k3, k4 = jax.random.split(k1)
    pred2 = jax.random.normal(k3, (3, 5, 33, 17), dtype=jnp.float32)
    target2 = (jax.random.uniform(k4, (3, 5, 33, 17)) > 0.5).astype(jnp.float32)
    loss2 = jax.block_until_ready(dice_loss(pred2, target2, tile_rows=8))
    ref2 = jax.block_until_ready(dice_loss_ref(pred2, target2))
    assert jnp.allclose(loss2, ref2, atol=1e-5, rtol=1e-5), (loss2, ref2)

    # 3) Lane-aligned zero-copy large path with an explicit 2-way split and
    #    multiple reduction steps per split.
    k5, k6 = jax.random.split(k2)
    pred3 = jax.random.normal(k5, (4, 8, 64, 64), dtype=jnp.float32)
    target3 = (jax.random.uniform(k6, (4, 8, 64, 64)) > 0.5).astype(jnp.float32)
    loss3 = jax.block_until_ready(
        dice_loss(pred3, target3, tile_rows=256, num_splits=2))
    ref3 = jax.block_until_ready(dice_loss_ref(pred3, target3))
    assert jnp.allclose(loss3, ref3, atol=1e-5, rtol=1e-5), (loss3, ref3)

    print("KERNEL_OK")
</pallas_src>

<mosaic_0001>
module attributes {stable_mosaic.version = 11 : i64} {
  func.func @kernel(%arg0: i32, %arg1: i32, %arg2: memref<16x128xf32, #tpu.memory_space<vmem>>, %arg3: memref<16x128xf32, #tpu.memory_space<vmem>>, %arg4: memref<1x8x128xf32, #tpu.memory_space<vmem>>, %arg5: memref<1x8x128xf32, #tpu.memory_space<vmem>>) attributes {dimension_semantics = [#tpu.dimension_semantics<parallel>, #tpu.dimension_semantics<arbitrary>], iteration_bounds = array<i64: 1, 1>, scalar_prefetch = 0 : i64, scratch_operands = 0 : i64, tpu.core_type = #tpu.core_type<tc>, window_params = [{transform_indices = @transform_0, window_bounds = array<i64: 16, 128>}, {transform_indices = @transform_1, window_bounds = array<i64: 16, 128>}, {transform_indices = @transform_2, window_bounds = array<i64: 1, 8, 128>}, {transform_indices = @transform_3, window_bounds = array<i64: 1, 8, 128>}]} {
    %c0_i32 = arith.constant 0 : i32
    %0 = arith.cmpi eq, %arg1, %c0_i32 : i32
    %1 = arith.extui %0 : i1 to i32
    %c0_i32_0 = arith.constant 0 : i32
    %2 = arith.cmpi ne, %1, %c0_i32_0 : i32
    scf.if %2 {
      %cst_20 = arith.constant 0.000000e+00 : f32
      %26 = vector.broadcast %cst_20 : f32 to vector<1x8x128xf32>
      %c0_21 = arith.constant 0 : index
      %c0_22 = arith.constant 0 : index
      %c0_23 = arith.constant 0 : index
      %27 = vector.load %arg4[%c0_21, %c0_22, %c0_23] : memref<1x8x128xf32, #tpu.memory_space<vmem>>, vector<1x8x128xf32>
      tpu.vector_store %arg4[%c0_21, %c0_22, %c0_23], %26 {strides = array<i32>} : memref<1x8x128xf32, #tpu.memory_space<vmem>>, vector<1x8x128xf32>,
      %cst_24 = arith.constant 0.000000e+00 : f32
      %28 = vector.broadcast %cst_24 : f32 to vector<1x8x128xf32>
      %c0_25 = arith.constant 0 : index
      %c0_26 = arith.constant 0 : index
      %c0_27 = arith.constant 0 : index
      %29 = vector.load %arg5[%c0_25, %c0_26, %c0_27] : memref<1x8x128xf32, #tpu.memory_space<vmem>>, vector<1x8x128xf32>
      tpu.vector_store %arg5[%c0_25, %c0_26, %c0_27], %28 {strides = array<i32>} : memref<1x8x128xf32, #tpu.memory_space<vmem>>, vector<1x8x128xf32>,
    } else {
    }
    %c0 = arith.constant 0 : index
    %c0_1 = arith.constant 0 : index
    %3 = vector.load %arg2[%c0, %c0_1] : memref<16x128xf32, #tpu.memory_space<vmem>>, vector<16x128xf32>
    %cst = arith.constant 5.000000e-01 : f32
    %4 = vector.broadcast %cst : f32 to vector<16x128xf32>
    %5 = arith.mulf %4, %3 : vector<16x128xf32>
    %6 = math.tanh %5 : vector<16x128xf32>
    %cst_2 = arith.constant 5.000000e-01 : f32
    %7 = vector.broadcast %cst_2 : f32 to vector<16x128xf32>
    %8 = arith.mulf %7, %6 : vector<16x128xf32>
    %cst_3 = arith.constant 5.000000e-01 : f32
    %9 = vector.broadcast %cst_3 : f32 to vector<16x128xf32>
    %10 = arith.addf %8, %9 : vector<16x128xf32>
    %c0_4 = arith.constant 0 : index
    %c0_5 = arith.constant 0 : index
    %11 = vector.load %arg3[%c0_4, %c0_5] : memref<16x128xf32, #tpu.memory_space<vmem>>, vector<16x128xf32>
    %c0_6 = arith.constant 0 : index
    %c0_7 = arith.constant 0 : index
    %c0_8 = arith.constant 0 : index
    %12 = vector.load %arg4[%c0_6, %c0_7, %c0_8] : memref<1x8x128xf32, #tpu.memory_space<vmem>>, vector<1x8x128xf32>
    %13 = arith.mulf %10, %11 : vector<16x128xf32>
    %14 = vector.shape_cast %13 : vector<16x128xf32> to vector<2x8x128xf32>
    %cst_9 = arith.constant dense<0.000000e+00> : vector<8x128xf32>
    %15 = vector.multi_reduction <add>, %14, %cst_9 [0] : vector<2x8x128xf32> to vector<8x128xf32>
    %16 = vector.shape_cast %15 : vector<8x128xf32> to vector<1x8x128xf32>
    %17 = arith.addf %12, %16 : vector<1x8x128xf32>
    %c0_10 = arith.constant 0 : index
    %c0_11 = arith.constant 0 : index
    %c0_12 = arith.constant 0 : index
    %18 = vector.load %arg4[%c0_10, %c0_11, %c0_12] : memref<1x8x128xf32, #tpu.memory_space<vmem>>, vector<1x8x128xf32>
    tpu.vector_store %arg4[%c0_10, %c0_11, %c0_12], %17 {strides = array<i32>} : memref<1x8x128xf32, #tpu.memory_space<vmem>>, vector<1x8x128xf32>,
    %c0_13 = arith.constant 0 : index
    %c0_14 = arith.constant 0 : index
    %c0_15 = arith.constant 0 : index
    %19 = vector.load %arg5[%c0_13, %c0_14, %c0_15] : memref<1x8x128xf32, #tpu.memory_space<vmem>>, vector<1x8x128xf32>
    %20 = arith.addf %10, %11 : vector<16x128xf32>
    %21 = vector.shape_cast %20 : vector<16x128xf32> to vector<2x8x128xf32>
    %cst_16 = arith.constant dense<0.000000e+00> : vector<8x128xf32>
    %22 = vector.multi_reduction <add>, %21, %cst_16 [0] : vector<2x8x128xf32> to vector<8x128xf32>
    %23 = vector.shape_cast %22 : vector<8x128xf32> to vector<1x8x128xf32>
    %24 = arith.addf %19, %23 : vector<1x8x128xf32>
    %c0_17 = arith.constant 0 : index
    %c0_18 = arith.constant 0 : index
    %c0_19 = arith.constant 0 : index
    %25 = vector.load %arg5[%c0_17, %c0_18, %c0_19] : memref<1x8x128xf32, #tpu.memory_space<vmem>>, vector<1x8x128xf32>
    tpu.vector_store %arg5[%c0_17, %c0_18, %c0_19], %24 {strides = array<i32>} : memref<1x8x128xf32, #tpu.memory_space<vmem>>, vector<1x8x128xf32>,
    return
  }
  func.func @transform_0(%arg0: i32, %arg1: i32) -> (i32, i32) {
    %c1_i32 = arith.constant 1 : i32
    %0 = arith.muli %arg0, %c1_i32 : i32
    %1 = arith.addi %0, %arg1 : i32
    %c0_i32 = arith.constant 0 : i32
    %c0_i32_0 = arith.constant 0 : i32
    return %1, %c0_i32 : i32, i32
  }
  func.func @transform_1(%arg0: i32, %arg1: i32) -> (i32, i32) {
    %c1_i32 = arith.constant 1 : i32
    %0 = arith.muli %arg0, %c1_i32 : i32
    %1 = arith.addi %0, %arg1 : i32
    %c0_i32 = arith.constant 0 : i32
    %c0_i32_0 = arith.constant 0 : i32
    return %1, %c0_i32 : i32, i32
  }
  func.func @transform_2(%arg0: i32, %arg1: i32) -> (i32, i32, i32) {
    %c0_i32 = arith.constant 0 : i32
    %c0_i32_0 = arith.constant 0 : i32
    %c0_i32_1 = arith.constant 0 : i32
    return %arg0, %c0_i32, %c0_i32_0 : i32, i32, i32
  }
  func.func @transform_3(%arg0: i32, %arg1: i32) -> (i32, i32, i32) {
    %c0_i32 = arith.constant 0 : i32
    %c0_i32_0 = arith.constant 0 : i32
    %c0_i32_1 = arith.constant 0 : i32
    return %arg0, %c0_i32, %c0_i32_0 : i32, i32, i32
  }
}

</mosaic_0001>

<bundles_post_ra>
// kernel: tpu_custom_call.1
= control target key start
LH: loop header
LB: loop body
LE: loop exit
PB: predicated region body
PF: predicated region fallthrough
CT: control target
= control target key end

     0   :  { %9 = vsyncpa [#allocation3], 0  ;;  %s276_s0 = inlined_call_operand.hbm [shape: f32[16,128], index: 0, kind: input, shape index: {}]   ;;  %s277_s1 = inlined_call_operand.hbm [shape: f32[16,128], index: 1, kind: input, shape index: {}]   ;;  %s278_s2 = inlined_call_operand.hbm [shape: f32[1,8,128], index: 2, kind: output, shape index: {0}]   ;;  %s279_s3 = inlined_call_operand.hbm [shape: f32[1,8,128], index: 3, kind: output, shape index: {1}]  }
   0x1   :  { %10 = vsyncpa [#allocation6], 0 }
   0x2   :  { %11 = vsyncpa [#allocation4], 0 }
   0x3   :  { %12 = vsyncpa [#allocation9], 0  ;;  %s21_s14 = sshll.u32 %s276_s0, 4  ;;  %s238_s15 = smov [#allocation2]   ;;  %s22_s14 = int_to_ptr.hbm [resolvable:$true] %s21_s14 }
   0x4   :  { %s23_s16 = sshll.u32 %s238_s15, 4  ;;  %s38_s19 = sshll.u32 %s277_s1, 4  ;;  %s24_s16 = int_to_ptr.vmem [resolvable:$true] %s23_s16  ;;  %s39_s19 = int_to_ptr.hbm [resolvable:$true] %s38_s19 }
   0x5   :  { %s239_s20 = smov 128   ;;  %s240_s21 = smov 8  }
   0x6   :  { %29 = dma.hbm_to_vmem [thread:$0]  %s22_s14, 256, %s24_s16, [#allocation3], %s239_s20, %s239_s20, %s240_s21  }
   0x7   :  { %s241_s22 = smov [#allocation5]  }
   0x8   :  { %s40_s23 = sshll.u32 %s241_s22, 4  ;;  %s41_s23 = int_to_ptr.vmem [resolvable:$true] %s40_s23 }
   0x9   :  { %46 = dma.hbm_to_vmem [thread:$0]  %s39_s19, 256, %s41_s23, [#allocation6], %s239_s20, %s239_s20, %s240_s21  }
   0xa   :  { %230 = dma.done.wait [#allocation3], 256  }
   0xb   :  { %231 = vsyncadd [#allocation3], 4294967040 }
   0xc   :  { %232 = dma.done.wait [#allocation6], 256  }
   0xd   :  { %233 = vsyncadd [#allocation6], 4294967040  ;;  %v65_v0 = vld [vmem:[#allocation2] sm:$0xff]  ;;  %v66_v1 = vld [vmem:[#allocation2 + $0x8] sm:$0xff]  ;;  %s242_s0 = smov [#allocation7]   ;;  %s96_s26 = sshll.u32 %s278_s2, 4  ;;  %s97_s26 = int_to_ptr.hbm [resolvable:$true] %s96_s26 }
   0xe   :  { %v67_v2 = vmul.f32 0.5, %v65_v0  ;;  %v68_v3 = vmul.f32 0.5, %v66_v1  ;;  %v75_v8 = vld [vmem:[#allocation5] sm:$0xff]  ;;  %v76_v10 = vld [vmem:[#allocation5 + $0x8] sm:$0xff]  ;;  %s94_s1 = sshll.u32 %s242_s0, 4  ;;  %s243_s27 = smov [#allocation8]   ;;  %s95_s1 = int_to_ptr.vmem [resolvable:$true] %s94_s1 }
   0xf   :  { %s105_s28 = sshll.u32 %s243_s27, 4  ;;  %s107_s4 = sshll.u32 %s279_s3, 4  ;;  %s106_s28 = int_to_ptr.vmem [resolvable:$true] %s105_s28  ;;  %s108_s4 = int_to_ptr.hbm [resolvable:$true] %s107_s4 }
  0x10   :  { %130 = vtanh.f32 %v67_v2 }
  0x11   :  { %132 = vtanh.f32 %v68_v3 }
  0x16   :  { %v131_v4 = vpop.eup %130 }
  0x17   :  { %v133_v5 = vpop.eup %132  ;;  %v71_v6 = vmul.f32 0.5, %v131_v4 }
  0x18   :  { %v72_v7 = vmul.f32 0.5, %v133_v5 }
  0x19   :  { %v73_v9 = vadd.f32 0.5, %v71_v6 }
  0x1a   :  { %v74_v11 = vadd.f32 0.5, %v72_v7 }
  0x1b   :  { %v78_v12 = vmul.f32 %v75_v8, %v73_v9  ;;  %v84_v13 = vadd.f32 %v75_v8, %v73_v9 }
  0x1c   :  { %v79_v14 = vmul.f32 %v76_v10, %v74_v11  ;;  %v85_v15 = vadd.f32 %v76_v10, %v74_v11 }
  0x1e   :  { %v80_v16 = vadd.f32 %v79_v14, %v78_v12  ;;  %v86_v17 = vadd.f32 %v85_v15, %v84_v13 }
  0x20   :  { %82 = vst [vmem:[#allocation7] sm:$0xff] %v80_v16 }
  0x21   :  { %88 = vst [vmem:[#allocation8] sm:$0xff] %v86_v17  ;;  %99 = dma.vmem_to_hbm [thread:$0]  %s95_s1, 128, %s97_s26, [#allocation4]  }
  0x22   :  { %110 = dma.vmem_to_hbm [thread:$0]  %s106_s28, 128, %s108_s4, [#allocation9]  }
  0x23   :  { %234 = dma.done.wait [#allocation4], 128  }
  0x24   :  { %235 = vsyncadd [#allocation4], 4294967168 }
  0x25   :  { %236 = dma.done.wait [#allocation9], 128  }
  0x26   :  { %237 = vsyncadd [#allocation9], 4294967168 }
  0x27   :  { %119 = vsyncpa [#allocation3], 1 }
  0x28   :  { %120 = vsyncpa [#allocation6], 1 }
  0x29   :  { %121 = vsyncpa [#allocation4], 1 }
  0x2a   :  { %122 = vsyncpa [#allocation9], 1 }

</bundles_post_ra>
